<compile_context>
chip_gen: v7x
topology: tpu7x:2x2x1
jax: 0.10.0
libtpu: 0.0.40
codegen_flags: <defaults>
</compile_context>

<pallas_src>
import math
import functools

import jax
import jax.numpy as jnp
from jax.experimental import pallas as pl
from jax.experimental.pallas import tpu as pltpu


# -----------------------------------------------------------------------------
# In-kernel building blocks
# -----------------------------------------------------------------------------
def _layer_norm_masked(x, ln_w, ln_b, d_true, eps=1e-5):
    """LayerNorm over the last dim counting only the first `d_true` features.

    Padded lanes of `x` are exactly zero on entry; padded lanes of ln_w / ln_b
    are zero, so padded output lanes come out zero as well.
    """
    dp = x.shape[-1]
    inv_d = 1.0 / float(d_true)
    mean = jnp.sum(x, axis=-1, keepdims=True) * inv_d          # padded lanes are 0
    cen = x - mean
    if d_true != dp:
        lane = jax.lax.broadcasted_iota(jnp.int32, (1, dp), 1)
        cen = cen * (lane < d_true).astype(jnp.float32)
    var = jnp.sum(cen * cen, axis=-1, keepdims=True) * inv_d
    return cen * jax.lax.rsqrt(var + eps) * ln_w + ln_b


def _encoder_body(sem_ref, ap_ref, wv_ref, bv_ref, wo_ref, bo_ref,
                  lnw_ref, lnb_ref, *, d_true, cdt):
    """v_proj -> attn_probs @ v -> out_proj -> + residual -> LayerNorm."""
    bb, seq, dp = sem_ref.shape
    sem = sem_ref[...]                                         # (BB, L, Dp) f32
    sem2 = sem.reshape(bb * seq, dp)                           # flatten for GEMMs

    v = jnp.dot(sem2.astype(cdt), wv_ref[...],
                preferred_element_type=jnp.float32) + bv_ref[...]
    attn = jnp.einsum("bij,bjd->bid",
                      ap_ref[...].astype(cdt),
                      v.reshape(bb, seq, dp).astype(cdt),
                      preferred_element_type=jnp.float32)
    x = jnp.dot(attn.reshape(bb * seq, dp).astype(cdt), wo_ref[...],
                preferred_element_type=jnp.float32) + bo_ref[...]
    x = x + sem2
    return _layer_norm_masked(x, lnw_ref[...], lnb_ref[...], d_true)   # (BB*L, Dp)


def _sa_body(x, wqkv, bqkv, wso, bso, *, num_heads, head_dim, bb, seq, cdt):
    """SA.forward(x, layer_norm=False); dropout is identity in eval mode.

    All heads are handled by TWO batched matmuls (scores + outputs) instead of a
    per-head loop: Q is replicated H times along the sublane axis and head-masked,
    so row h*L+i of the score matrix is exactly q_h[i] . k_h[j].
    """
    dp = wso.shape[0]
    scaling = float(head_dim) ** -0.5

    # Fused QKV: one (BB*L, Dp) @ (Dp, 3*Dp) MXU issue; slices are 128-lane aligned.
    qkv = jnp.dot(x.astype(cdt), wqkv,
                  preferred_element_type=jnp.float32) + bqkv
    q = (qkv[:, 0 * dp:1 * dp] * scaling).reshape(bb, seq, dp)
    k = qkv[:, 1 * dp:2 * dp].reshape(bb, seq, dp)
    v = qkv[:, 2 * dp:3 * dp].reshape(bb, seq, dp)

    hl = num_heads * seq
    # Constant head mask: row h*L+i keeps only lanes [h*hd, (h+1)*hd).
    row_head = jax.lax.broadcasted_iota(jnp.int32, (hl, dp), 0) // seq
    lane = jax.lax.broadcasted_iota(jnp.int32, (hl, dp), 1)
    mask_flat = ((lane >= row_head * head_dim) &
                 (lane < (row_head + 1) * head_dim)).astype(jnp.float32)   # (H*L, Dp)

    # Replicate Q per head along the sublane axis (leading-dim only, layout-safe)
    # and mask it; K stays un-replicated.
    q_rep = jnp.concatenate([q] * num_heads, axis=1) * mask_flat           # (BB, H*L, Dp)

    # All heads' scores in one batched MXU issue per batch element.
    s = jnp.einsum("bxd,bjd->bxj", q_rep.astype(cdt), k.astype(cdt),
                   preferred_element_type=jnp.float32)                     # (BB, H*L, L)
    s = s - jnp.max(s, axis=-1, keepdims=True)                             # exact per-head max
    p = jnp.exp(s)
    p = p * pl.reciprocal(jnp.sum(p, axis=-1, keepdims=True), approx=True)

    # All heads' outputs in one batched MXU issue; keep each head's lanes and fold
    # the heads back onto the seq axis with a single leading-dim reshape + sum.
    o = jnp.einsum("bxj,bjd->bxd", p.astype(cdt), v.astype(cdt),
                   preferred_element_type=jnp.float32)                     # (BB, H*L, Dp)
    o = (o * mask_flat).reshape(bb, num_heads, seq, dp).sum(axis=1)        # (BB, L, Dp)

    y = jnp.dot(o.reshape(bb * seq, dp).astype(cdt), wso,
                preferred_element_type=jnp.float32) + bso
    return x + y                                                           # residual


# -----------------------------------------------------------------------------
# Kernels
# -----------------------------------------------------------------------------
def _encoder_kernel(sem_ref, ap_ref, wv_ref, bv_ref, wo_ref, bo_ref,
                    lnw_ref, lnb_ref, out_ref, *, d_true, cdt):
    bb, seq, dp = sem_ref.shape
    x = _encoder_body(sem_ref, ap_ref, wv_ref, bv_ref, wo_ref, bo_ref,
                      lnw_ref, lnb_ref, d_true=d_true, cdt=cdt)
    out_ref[...] = x.reshape(bb, seq, dp).astype(out_ref.dtype)


def _encoder_sa_kernel(sem_ref, ap_ref, wv_ref, bv_ref, wo_ref, bo_ref,
                       lnw_ref, lnb_ref, wqkv_ref, bqkv_ref, wso_ref, bso_ref,
                       out_ref, *, d_true, num_heads, head_dim, cdt):
    bb, seq, dp = sem_ref.shape
    x = _encoder_body(sem_ref, ap_ref, wv_ref, bv_ref, wo_ref, bo_ref,
                      lnw_ref, lnb_ref, d_true=d_true, cdt=cdt)
    x = _sa_body(x, wqkv_ref[...], bqkv_ref[...], wso_ref[...], bso_ref[...],
                 num_heads=num_heads, head_dim=head_dim, bb=bb, seq=seq, cdt=cdt)
    out_ref[...] = x.reshape(bb, seq, dp).astype(out_ref.dtype)


# -----------------------------------------------------------------------------
# Wrapper helpers
# -----------------------------------------------------------------------------
def _pad_last(x, target):
    pad = target - x.shape[-1]
    if pad == 0:
        return x
    return jnp.pad(x, [(0, 0)] * (x.ndim - 1) + [(0, pad)])


def _pad_square(w, dp):
    return jnp.pad(w, ((0, dp - w.shape[0]), (0, dp - w.shape[1])))


def _device_kind():
    try:
        return jax.devices()[0].device_kind.lower()
    except Exception:
        return ""


def _num_tensorcores_per_device():
    """Conservative TC-count guess: 2 only for clearly dual-TC / megacore parts."""
    kind = _device_kind()
    if "lite" in kind or "v5e" in kind or "v6e" in kind:
        return 1
    if any(tag in kind for tag in ("v7", "v4", "v5p")):
        return 2
    return 1


def _auto_compute_dtype():
    """bf16 MXU operands on bf16-native generations (v6e / v7x), f32 otherwise."""
    kind = _device_kind()
    if any(tag in kind for tag in ("v6", "v7")):
        return jnp.bfloat16
    return jnp.float32


# -----------------------------------------------------------------------------
# Wrapper
# -----------------------------------------------------------------------------
def semantic_encoder_pallas(params, semantics, attn_probs, *, post_sa=False,
                            num_heads=12, batch_block=None, compute_dtype=None):
    """Returns the lane-dense padded output (B, L, ceil(D/128)*128).

    Lanes [D:] are exactly zero; slice `out[..., :D]` in the consumer if the
    un-padded layout is required.
    """
    B, L, D = semantics.shape
    assert attn_probs.shape == (B, L, L)
    if post_sa:
        assert D % num_heads == 0, "embed_dim must be divisible by num_heads"

    if compute_dtype is None:
        compute_dtype = _auto_compute_dtype()
    cdt = compute_dtype

    dp = pl.cdiv(D, 128) * 128             # lane-dense padded feature dim

    # Grid: one step on single-TC chips; TC-count "parallel" steps on dual-TC chips.
    if batch_block is None:
        n_tc = _num_tensorcores_per_device()
        if n_tc > 1 and B >= n_tc and B % n_tc == 0:
            batch_block = B // n_tc
        else:
            batch_block = B
    assert B % batch_block == 0
    steps = B // batch_block

    f32 = jnp.float32
    sem_p = _pad_last(semantics.astype(f32), dp)
    # attn_probs can travel in bf16 when the MXU operands are bf16 (halves DMA bytes).
    ap = attn_probs.astype(cdt if cdt == jnp.bfloat16 else f32)

    # Pre-transpose (nn.Linear stores (out, in); kernel computes x @ W^T = x @ Wt).
    wv_t = _pad_square(params["wv"].T, dp).astype(cdt)
    wo_t = _pad_square(params["wo"].T, dp).astype(cdt)
    bv = _pad_last(params["bv"], dp)[None, :].astype(f32)
    bo = _pad_last(params["bo"], dp)[None, :].astype(f32)
    ln_w = _pad_last(params["ln_w"], dp)[None, :].astype(f32)
    ln_b = _pad_last(params["ln_b"], dp)[None, :].astype(f32)

    act_spec = pl.BlockSpec((batch_block, L, dp), lambda g: (g, 0, 0))
    ap_spec = pl.BlockSpec((batch_block, L, L), lambda g: (g, 0, 0))
    w_spec = pl.BlockSpec((dp, dp), lambda g: (0, 0))
    b_spec = pl.BlockSpec((1, dp), lambda g: (0, 0))

    inputs = [sem_p, ap, wv_t, bv, wo_t, bo, ln_w, ln_b]
    specs = [act_spec, ap_spec, w_spec, b_spec, w_spec, b_spec, b_spec, b_spec]

    if not post_sa:
        kernel = functools.partial(_encoder_kernel, d_true=D, cdt=cdt)
        n_weight_mats = 2
    else:
        head_dim = D // num_heads
        # Fused, pre-transposed QKV weight: each of q/k/v padded to Dp columns so
        # the in-kernel slices land on 128-lane boundaries.
        wqkv_t = jnp.concatenate(
            [_pad_square(params["sa_wq"].T, dp),
             _pad_square(params["sa_wk"].T, dp),
             _pad_square(params["sa_wv"].T, dp)], axis=1).astype(cdt)
        bqkv = jnp.concatenate(
            [_pad_last(params["sa_bq"], dp),
             _pad_last(params["sa_bk"], dp),
             _pad_last(params["sa_bv"], dp)])[None, :].astype(f32)
        wso_t = _pad_square(params["sa_wo"].T, dp).astype(cdt)
        bso = _pad_last(params["sa_bo"], dp)[None, :].astype(f32)

        inputs += [wqkv_t, bqkv, wso_t, bso]
        specs += [pl.BlockSpec((dp, 3 * dp), lambda g: (0, 0)),
                  pl.BlockSpec((1, 3 * dp), lambda g: (0, 0)),
                  w_spec, b_spec]
        kernel = functools.partial(_encoder_sa_kernel, d_true=D,
                                   num_heads=num_heads, head_dim=head_dim, cdt=cdt)
        n_weight_mats = 6

    # Explicit, generation-safe VMEM budget (never below the scoped defaults,
    # capped at v7x's 64 MiB physical VMEM).
    w_item = jnp.dtype(cdt).itemsize
    act_bytes = batch_block * L * dp * 4
    ap_bytes = batch_block * L * L * jnp.dtype(ap.dtype).itemsize
    weight_bytes = n_weight_mats * dp * dp * w_item + 8 * dp * 4
    est = 4 * act_bytes + 2 * ap_bytes + 2 * weight_bytes
    if post_sa:
        est += batch_block * L * (3 * dp) * 4                 # fused qkv temp
        est += 3 * batch_block * num_heads * L * dp * 4       # q_rep / o / masks
    vmem_limit = int(min(64 * 2 ** 20, max(32 * 2 ** 20, 3 * est)))

    out = pl.pallas_call(
        kernel,
        out_shape=jax.ShapeDtypeStruct((B, L, dp), semantics.dtype),
        grid=(steps,),
        in_specs=specs,
        out_specs=act_spec,
        compiler_params=pltpu.CompilerParams(
            dimension_semantics=("parallel",),
            vmem_limit_bytes=vmem_limit),
    )(*inputs)
    return out                                                # padded, lane-dense


# -----------------------------------------------------------------------------
# Pure-JAX reference (mirrors the PyTorch forward exactly)
# -----------------------------------------------------------------------------
def semantic_encoder_ref(params, semantics, attn_probs, *, post_sa=False, num_heads=12):
    v = semantics @ params["wv"].T + params["bv"]
    attn = jnp.einsum("bij,bjd->bid", attn_probs, v)
    x = attn @ params["wo"].T + params["bo"] + semantics
    mean = x.mean(-1, keepdims=True)
    var = ((x - mean) ** 2).mean(-1, keepdims=True)
    x = (x - mean) / jnp.sqrt(var + 1e-5) * params["ln_w"] + params["ln_b"]
    if post_sa:
        B, L, D = x.shape
        hd = D // num_heads
        q = (x @ params["sa_wq"].T + params["sa_bq"]) * hd ** (-0.5)
        k = x @ params["sa_wk"].T + params["sa_bk"]
        vv = x @ params["sa_wv"].T + params["sa_bv"]
        qh = q.reshape(B, L, num_heads, hd).transpose(0, 2, 1, 3)
        kh = k.reshape(B, L, num_heads, hd).transpose(0, 2, 1, 3)
        vh = vv.reshape(B, L, num_heads, hd).transpose(0, 2, 1, 3)
        s = jnp.einsum("bhld,bhmd->bhlm", qh, kh)
        p = jax.nn.softmax(s, axis=-1)
        a = jnp.einsum("bhlm,bhmd->bhld", p, vh)
        a = a.transpose(0, 2, 1, 3).reshape(B, L, D)
        y = a @ params["sa_wo"].T + params["sa_bo"]
        x = x + y
    return x


# -----------------------------------------------------------------------------
# Deterministic parameter init (matches shapes + init scheme of the PyTorch module)
# -----------------------------------------------------------------------------
def xavier_uniform(key, shape, gain=1.0):
    fan_out, fan_in = shape
    bound = gain * math.sqrt(6.0 / (fan_in + fan_out))
    return jax.random.uniform(key, shape, jnp.float32, -bound, bound)


def linear_bias(key, fan_in, dim):
    bound = 1.0 / math.sqrt(fan_in)
    return jax.random.uniform(key, (dim,), jnp.float32, -bound, bound)


def make_params(key, D):
    ks = jax.random.split(key, 16)
    g = 1.0 / math.sqrt(2.0)
    return {
        # SemanticEncoder
        "wv": xavier_uniform(ks[0], (D, D), gain=g),
        "bv": linear_bias(ks[1], D, D),
        "wo": xavier_uniform(ks[2], (D, D), gain=1.0),
        "bo": jnp.zeros((D,), jnp.float32),           # constant_(out_proj.bias, 0)
        "ln_w": jnp.ones((D,), jnp.float32),
        "ln_b": jnp.zeros((D,), jnp.float32),
        # SA (post_sa=True path), num_heads=12
        "sa_wq": xavier_uniform(ks[3], (D, D), gain=g),
        "sa_bq": linear_bias(ks[4], D, D),
        "sa_wk": xavier_uniform(ks[5], (D, D), gain=g),
        "sa_bk": linear_bias(ks[6], D, D),
        "sa_wv": xavier_uniform(ks[7], (D, D), gain=g),
        "sa_bv": linear_bias(ks[8], D, D),
        "sa_wo": xavier_uniform(ks[9], (D, D), gain=1.0),
        "sa_bo": jnp.zeros((D,), jnp.float32),
    }


# -----------------------------------------------------------------------------
# Demo
# -----------------------------------------------------------------------------
if __name__ == "__main__":
    B, L, D = 2, 16, 96          # D divisible by num_heads=12 for the post_sa path
    NUM_HEADS = 12
    DP = 128                     # padded lane-dense feature dim returned by the kernel

    key = jax.random.PRNGKey(0)
    kp, ks, ka = jax.random.split(key, 3)
    params = make_params(kp, D)

    semantics = jax.random.normal(ks, (B, L, D), jnp.float32)
    # attn_probs: row-stochastic attention weights, as produced by a softmax upstream
    attn_logits = jax.random.normal(ka, (B, L, L), jnp.float32)
    attn_probs = jax.nn.softmax(attn_logits, axis=-1)

    # post_sa=False (module default), f32 MXU path -> tight tolerance
    out0 = semantic_encoder_pallas(params, semantics, attn_probs, post_sa=False,
                                   compute_dtype=jnp.float32)
    out0 = jax.block_until_ready(out0)
    ref0 = semantic_encoder_ref(params, semantics, attn_probs, post_sa=False)
    assert out0.shape == (B, L, DP)
    assert jnp.allclose(out0[:, :, :D], ref0, atol=1e-4, rtol=1e-4), "post_sa=False mismatch"
    assert float(jnp.max(jnp.abs(out0[:, :, D:]))) < 1e-5, "padded lanes must be zero"

    # post_sa=True (12 heads; dropout identity in eval).  Slightly looser tolerance
    # because the fused kernel uses the EUP approximate reciprocal in softmax.
    out1 = semantic_encoder_pallas(params, semantics, attn_probs,
                                   post_sa=True, num_heads=NUM_HEADS,
                                   compute_dtype=jnp.float32)
    out1 = jax.block_until_ready(out1)
    ref1 = semantic_encoder_ref(params, semantics, attn_probs,
                                post_sa=True, num_heads=NUM_HEADS)
    assert out1.shape == (B, L, DP)
    assert jnp.allclose(out1[:, :, :D], ref1, atol=2e-3, rtol=2e-3), "post_sa=True mismatch"
    assert float(jnp.max(jnp.abs(out1[:, :, D:]))) < 1e-5, "padded lanes must be zero"

    # Auto compute_dtype (bf16 MXU operands on v6e/v7x, f32 elsewhere; f32 accumulation).
    # Loose sanity check vs the f32 reference.
    out_auto = semantic_encoder_pallas(params, semantics, attn_probs,
                                       post_sa=True, num_heads=NUM_HEADS)
    out_auto = jax.block_until_ready(out_auto)
    assert out_auto.shape == (B, L, DP)
    assert float(jnp.max(jnp.abs(out_auto[:, :, :D] - ref1))) < 0.25, "auto-dtype sanity check"

    print("KERNEL_OK")
</pallas_src>

<mosaic_0001>
module attributes {stable_mosaic.version = 11 : i64} {
  func.func @_encoder_kernel(%arg0: i32, %arg1: memref<2x16x128xf32, #tpu.memory_space<vmem>>, %arg2: memref<2x16x16xf32, #tpu.memory_space<vmem>>, %arg3: memref<128x128xf32, #tpu.memory_space<vmem>>, %arg4: memref<1x128xf32, #tpu.memory_space<vmem>>, %arg5: memref<128x128xf32, #tpu.memory_space<vmem>>, %arg6: memref<1x128xf32, #tpu.memory_space<vmem>>, %arg7: memref<1x128xf32, #tpu.memory_space<vmem>>, %arg8: memref<1x128xf32, #tpu.memory_space<vmem>>, %arg9: memref<2x16x128xf32, #tpu.memory_space<vmem>>) attributes {dimension_semantics = [#tpu.dimension_semantics<parallel>], iteration_bounds = array<i64: 1>, scalar_prefetch = 0 : i64, scratch_operands = 0 : i64, tpu.core_type = #tpu.core_type<tc>, window_params = [{transform_indices = @transform_0, window_bounds = array<i64: 2, 16, 128>}, {transform_indices = @transform_1, window_bounds = array<i64: 2, 16, 16>}, {pipeline_mode = #tpu.pipeline_mode<synchronous>, transform_indices = @transform_2, window_bounds = array<i64: 128, 128>}, {pipeline_mode = #tpu.pipeline_mode<synchronous>, transform_indices = @transform_3, window_bounds = array<i64: 1, 128>}, {pipeline_mode = #tpu.pipeline_mode<synchronous>, transform_indices = @transform_4, window_bounds = array<i64: 128, 128>}, {pipeline_mode = #tpu.pipeline_mode<synchronous>, transform_indices = @transform_5, window_bounds = array<i64: 1, 128>}, {pipeline_mode = #tpu.pipeline_mode<synchronous>, transform_indices = @transform_6, window_bounds = array<i64: 1, 128>}, {pipeline_mode = #tpu.pipeline_mode<synchronous>, transform_indices = @transform_7, window_bounds = array<i64: 1, 128>}, {transform_indices = @transform_8, window_bounds = array<i64: 2, 16, 128>}]} {
    %c0 = arith.constant 0 : index
    %c0_0 = arith.constant 0 : index
    %c0_1 = arith.constant 0 : index
    %0 = vector.load %arg1[%c0, %c0_0, %c0_1] : memref<2x16x128xf32, #tpu.memory_space<vmem>>, vector<2x16x128xf32>
    %1 = vector.shape_cast %0 : vector<2x16x128xf32> to vector<32x128xf32>
    %c0_2 = arith.constant 0 : index
    %c0_3 = arith.constant 0 : index
    %2 = vector.load %arg3[%c0_2, %c0_3] : memref<128x128xf32, #tpu.memory_space<vmem>>, vector<128x128xf32>
    %cst = arith.constant dense<0.000000e+00> : vector<32x128xf32>
    %3 = tpu.matmul %1, %2, %cst {dimension_numbers = #tpu.dot_dimension_numbers<[1], [0], [0], [1], [0, 0, 1, 1], [], []>} : vector<32x128xf32>, vector<128x128xf32>, vector<32x128xf32> -> vector<32x128xf32>
    %c0_4 = arith.constant 0 : index
    %c0_5 = arith.constant 0 : index
    %4 = vector.load %arg4[%c0_4, %c0_5] : memref<1x128xf32, #tpu.memory_space<vmem>>, vector<1x128xf32>
    %5 = vector.broadcast %4 : vector<1x128xf32> to vector<32x128xf32>
    %6 = arith.addf %3, %5 : vector<32x128xf32>
    %c0_6 = arith.constant 0 : index
    %c0_7 = arith.constant 0 : index
    %c0_8 = arith.constant 0 : index
    %7 = vector.load %arg2[%c0_6, %c0_7, %c0_8] : memref<2x16x16xf32, #tpu.memory_space<vmem>>, vector<2x16x16xf32>
    %8 = vector.shape_cast %6 : vector<32x128xf32> to vector<2x16x128xf32>
    "tpu.trace_start"() <{level = 10 : i32, message = "bij,bjd->bid"}> : () -> ()
    %cst_9 = arith.constant dense<0.000000e+00> : vector<2x16x128xf32>
    %9 = tpu.matmul %7, %8, %cst_9 {dimension_numbers = #tpu.dot_dimension_numbers<[2], [1], [1], [2], [0, 0, 0, 1, 1, 2], [0], [0]>} : vector<2x16x16xf32>, vector<2x16x128xf32>, vector<2x16x128xf32> -> vector<2x16x128xf32>
    "tpu.trace_stop"() : () -> ()
    %10 = vector.shape_cast %9 : vector<2x16x128xf32> to vector<32x128xf32>
    %c0_10 = arith.constant 0 : index
    %c0_11 = arith.constant 0 : index
    %11 = vector.load %arg5[%c0_10, %c0_11] : memref<128x128xf32, #tpu.memory_space<vmem>>, vector<128x128xf32>
    %cst_12 = arith.constant dense<0.000000e+00> : vector<32x128xf32>
    %12 = tpu.matmul %10, %11, %cst_12 {dimension_numbers = #tpu.dot_dimension_numbers<[1], [0], [0], [1], [0, 0, 1, 1], [], []>} : vector<32x128xf32>, vector<128x128xf32>, vector<32x128xf32> -> vector<32x128xf32>
    %c0_13 = arith.constant 0 : index
    %c0_14 = arith.constant 0 : index
    %13 = vector.load %arg6[%c0_13, %c0_14] : memref<1x128xf32, #tpu.memory_space<vmem>>, vector<1x128xf32>
    %14 = vector.broadcast %13 : vector<1x128xf32> to vector<32x128xf32>
    %15 = arith.addf %12, %14 : vector<32x128xf32>
    %16 = arith.addf %15, %1 : vector<32x128xf32>
    %c0_15 = arith.constant 0 : index
    %c0_16 = arith.constant 0 : index
    %17 = vector.load %arg7[%c0_15, %c0_16] : memref<1x128xf32, #tpu.memory_space<vmem>>, vector<1x128xf32>
    %c0_17 = arith.constant 0 : index
    %c0_18 = arith.constant 0 : index
    %18 = vector.load %arg8[%c0_17, %c0_18] : memref<1x128xf32, #tpu.memory_space<vmem>>, vector<1x128xf32>
    %cst_19 = arith.constant dense<0.000000e+00> : vector<32xf32>
    %19 = vector.multi_reduction <add>, %16, %cst_19 [1] : vector<32x128xf32> to vector<32xf32>
    %20 = vector.shape_cast %19 : vector<32xf32> to vector<32x1xf32>
    %cst_20 = arith.constant 0.010416667 : f32
    %21 = vector.broadcast %cst_20 : f32 to vector<32x1xf32>
    %22 = arith.mulf %20, %21 : vector<32x1xf32>
    %23 = vector.broadcast %22 : vector<32x1xf32> to vector<32x128xf32>
    %24 = arith.subf %16, %23 : vector<32x128xf32>
    %25 = tpu.iota {dimensions = array<i32: 1>} : vector<1x128xi32>
    %c96_i32 = arith.constant 96 : i32
    %26 = vector.broadcast %c96_i32 : i32 to vector<1x128xi32>
    %27 = arith.cmpi slt, %25, %26 : vector<1x128xi32>
    %28 = arith.extui %27 : vector<1x128xi1> to vector<1x128xi32>
    %29 = arith.sitofp %28 : vector<1x128xi32> to vector<1x128xf32>
    %30 = vector.broadcast %29 : vector<1x128xf32> to vector<32x128xf32>
    %31 = arith.mulf %24, %30 : vector<32x128xf32>
    %32 = arith.mulf %31, %31 : vector<32x128xf32>
    %cst_21 = arith.constant dense<0.000000e+00> : vector<32xf32>
    %33 = vector.multi_reduction <add>, %32, %cst_21 [1] : vector<32x128xf32> to vector<32xf32>
    %34 = vector.shape_cast %33 : vector<32xf32> to vector<32x1xf32>
    %cst_22 = arith.constant 0.010416667 : f32
    %35 = vector.broadcast %cst_22 : f32 to vector<32x1xf32>
    %36 = arith.mulf %34, %35 : vector<32x1xf32>
    %cst_23 = arith.constant 9.99999974E-6 : f32
    %37 = vector.broadcast %cst_23 : f32 to vector<32x1xf32>
    %38 = arith.addf %36, %37 : vector<32x1xf32>
    %39 = math.rsqrt %38 : vector<32x1xf32>
    %40 = vector.broadcast %39 : vector<32x1xf32> to vector<32x128xf32>
    %41 = arith.mulf %31, %40 : vector<32x128xf32>
    %42 = vector.broadcast %17 : vector<1x128xf32> to vector<32x128xf32>
    %43 = arith.mulf %41, %42 : vector<32x128xf32>
    %44 = vector.broadcast %18 : vector<1x128xf32> to vector<32x128xf32>
    %45 = arith.addf %43, %44 : vector<32x128xf32>
    %46 = vector.shape_cast %45 : vector<32x128xf32> to vector<2x16x128xf32>
    %c0_24 = arith.constant 0 : index
    %c0_25 = arith.constant 0 : index
    %c0_26 = arith.constant 0 : index
    %47 = vector.load %arg9[%c0_24, %c0_25, %c0_26] : memref<2x16x128xf32, #tpu.memory_space<vmem>>, vector<2x16x128xf32>
    tpu.vector_store %arg9[%c0_24, %c0_25, %c0_26], %46 {strides = array<i32>} : memref<2x16x128xf32, #tpu.memory_space<vmem>>, vector<2x16x128xf32>,
    return
  }
  func.func @transform_0(%arg0: i32) -> (i32, i32, i32) {
    %c0_i32 = arith.constant 0 : i32
    %c0_i32_0 = arith.constant 0 : i32
    %c0_i32_1 = arith.constant 0 : i32
    return %arg0, %c0_i32, %c0_i32_0 : i32, i32, i32
  }
  func.func @transform_1(%arg0: i32) -> (i32, i32, i32) {
    %c0_i32 = arith.constant 0 : i32
    %c0_i32_0 = arith.constant 0 : i32
    %c0_i32_1 = arith.constant 0 : i32
    return %arg0, %c0_i32, %c0_i32_0 : i32, i32, i32
  }
  func.func @transform_2(%arg0: i32) -> (i32, i32) {
    %c0_i32 = arith.constant 0 : i32
    %c0_i32_0 = arith.constant 0 : i32
    %c0_i32_1 = arith.constant 0 : i32
    return %c0_i32, %c0_i32_0 : i32, i32
  }
  func.func @transform_3(%arg0: i32) -> (i32, i32) {
    %c0_i32 = arith.constant 0 : i32
    %c0_i32_0 = arith.constant 0 : i32
    %c0_i32_1 = arith.constant 0 : i32
    return %c0_i32, %c0_i32_0 : i32, i32
  }
  func.func @transform_4(%arg0: i32) -> (i32, i32) {
    %c0_i32 = arith.constant 0 : i32
    %c0_i32_0 = arith.constant 0 : i32
    %c0_i32_1 = arith.constant 0 : i32
    return %c0_i32, %c0_i32_0 : i32, i32
  }
  func.func @transform_5(%arg0: i32) -> (i32, i32) {
    %c0_i32 = arith.constant 0 : i32
    %c0_i32_0 = arith.constant 0 : i32
    %c0_i32_1 = arith.constant 0 : i32
    return %c0_i32, %c0_i32_0 : i32, i32
  }
  func.func @transform_6(%arg0: i32) -> (i32, i32) {
    %c0_i32 = arith.constant 0 : i32
    %c0_i32_0 = arith.constant 0 : i32
    %c0_i32_1 = arith.constant 0 : i32
    return %c0_i32, %c0_i32_0 : i32, i32
  }
  func.func @transform_7(%arg0: i32) -> (i32, i32) {
    %c0_i32 = arith.constant 0 : i32
    %c0_i32_0 = arith.constant 0 : i32
    %c0_i32_1 = arith.constant 0 : i32
    return %c0_i32, %c0_i32_0 : i32, i32
  }
  func.func @transform_8(%arg0: i32) -> (i32, i32, i32) {
    %c0_i32 = arith.constant 0 : i32
    %c0_i32_0 = arith.constant 0 : i32
    %c0_i32_1 = arith.constant 0 : i32
    return %arg0, %c0_i32, %c0_i32_0 : i32, i32, i32
  }
}

</mosaic_0001>

<bundles_post_ra>
// kernel: tpu_custom_call.1
= control target key start
LH: loop header
LB: loop body
LE: loop exit
PB: predicated region body
PF: predicated region fallthrough
CT: control target
= control target key end

     0   :  { %13 = vsyncpa [#allocation3], 0  ;;  %s1101_s0 = inlined_call_operand.hbm [shape: f32[2,16,128], index: 0, kind: input, shape index: {}]   ;;  %s1102_s1 = inlined_call_operand.hbm [shape: f32[2,16,16], index: 1, kind: input, shape index: {}]   ;;  %s1103_s2 = inlined_call_operand.hbm [shape: f32[128,128], index: 2, kind: input, shape index: {}]   ;;  %s1104_s3 = inlined_call_operand.vmem [shape: f32[1,128], index: 3, kind: input, shape index: {}]   ;;  %s1105_s4 = inlined_call_operand.hbm [shape: f32[128,128], index: 4, kind: input, shape index: {}]   ;;  %s1106_s5 = inlined_call_operand.vmem [shape: f32[1,128], index: 5, kind: input, shape index: {}]   ;;  %s1107_s6 = inlined_call_operand.vmem [shape: f32[1,128], index: 6, kind: input, shape index: {}]   ;;  %s1108_s7 = inlined_call_operand.vmem [shape: f32[1,128], index: 7, kind: input, shape index: {}]   ;;  %s1109_s8 = inlined_call_operand.hbm [shape: f32[2,16,128], index: 8, kind: output, shape index: {}]  }
   0x1   :  { %14 = vsyncpa [#allocation6], 0 }
   0x2   :  { %15 = vsyncpa [#allocation9], 0 }
   0x3   :  { %16 = vsyncpa [#allocation4], 0  ;;  %s927_s27 = smov [#allocation5]   ;;  %s928_s29 = smov [#allocation2]  }
   0x4   :  { %s34_s28 = sshll.u32 %s927_s27, 4  ;;  %s22_s30 = sshll.u32 %s928_s29, 4  ;;  %s35_s28 = int_to_ptr.vmem [resolvable:$true] %s34_s28  ;;  %s980_s30 = int_to_ptr.vmem [resolvable:$true] %s22_s30 }
   0x5   :  { %s809_s11 = scalar_lea.hbm %s1102_s1, 512 }
   0x6   :  { %p810_p0 = scmp.ne.s32.totalorder %s1102_s1, %s809_s11  ;;  %p813_p1 = scmp.lt.u32.totalorder %s809_s11, %s1102_s1 }
   0x8   :  { %p815_p2 = pnand %p813_p1, %p810_p0 }
   0xa   :  { %818 = shalt.err (!%p815_p2)
}
   0xb   :  { %s819_s16 = scalar_lea.vmem %s35_s28, 512  ;;  %p824_p4 = scmp.lt.s32.totalorder %s35_s28, %s35_s28 }
   0xc   :  { %p820_p3 = scmp.ne.s32.totalorder %s35_s28, %s819_s16  ;;  %p825_p5 = scmp.lt.s32.totalorder %s819_s16, %s819_s16 }
   0xe   :  { %p826_p6 = por %p825_p5, %p824_p4 }
  0x10   :  { %p827_p7 = pnand %p826_p6, %p820_p3 }
  0x12   :  { %830 = shalt.err (!%p827_p7)
}
  0x13   :  { %s929_s17 = smov 128   ;;  %s930_s18 = smov 8  }
  0x14   :  { %40 = dma.hbm_to_vmem [thread:$0]  %s1102_s1, 512, %s35_s28, [#allocation6], %s929_s17, %s929_s17, %s930_s18  }
  0x15   :  { %s831_s23 = scalar_lea.hbm %s1101_s0, 512 }
  0x16   :  { %p832_p8 = scmp.ne.s32.totalorder %s1101_s0, %s831_s23  ;;  %p835_p9 = scmp.lt.u32.totalorder %s831_s23, %s1101_s0 }
  0x18   :  { %p837_p10 = pnand %p835_p9, %p832_p8 }
  0x1a   :  { %840 = shalt.err (!%p837_p10)
}
  0x1b   :  { %s841_s29 = scalar_lea.vmem %s980_s30, 512  ;;  %p846_p12 = scmp.lt.s32.totalorder %s980_s30, %s980_s30 }
  0x1c   :  { %p842_p11 = scmp.ne.s32.totalorder %s980_s30, %s841_s29  ;;  %p847_p13 = scmp.lt.s32.totalorder %s841_s29, %s841_s29 }
  0x1e   :  { %p848_p0 = por %p847_p13, %p846_p12 }
  0x20   :  { %p849_p1 = pnand %p848_p0, %p842_p11 }
  0x22   :  { %852 = shalt.err (!%p849_p1)
}
  0x23   :  { %28 = dma.hbm_to_vmem [thread:$0]  %s1101_s0, 512, %s980_s30, [#allocation3], %s929_s17, %s929_s17, %s930_s18  }
  0x24   :  { %s931_s9 = smov [#allocation7]   ;;  %s932_s11 = smov [#allocation8]  }
  0x25   :  { %s46_s10 = sshll.u32 %s931_s9, 4  ;;  %s60_s12 = sshll.u32 %s932_s11, 4  ;;  %s47_s10 = int_to_ptr.vmem [resolvable:$true] %s46_s10  ;;  %s1017_s12 = int_to_ptr.vmem [resolvable:$true] %s60_s12 }
  0x26   :  { %s853_s15 = scalar_lea.hbm %s1103_s2, 2048 }
  0x27   :  { %p854_p2 = scmp.ne.s32.totalorder %s1103_s2, %s853_s15  ;;  %p857_p3 = scmp.lt.u32.totalorder %s853_s15, %s1103_s2 }
  0x29   :  { %p859_p4 = pnand %p857_p3, %p854_p2 }
  0x2b   :  { %862 = shalt.err (!%p859_p4)
}
  0x2c   :  { %s863_s0 = scalar_lea.vmem %s47_s10, 2048  ;;  %p868_p6 = scmp.lt.s32.totalorder %s47_s10, %s47_s10 }
  0x2d   :  { %p864_p5 = scmp.ne.s32.totalorder %s47_s10, %s863_s0  ;;  %p869_p7 = scmp.lt.s32.totalorder %s863_s0, %s863_s0 }
  0x2f   :  { %p870_p8 = por %p869_p7, %p868_p6 }
  0x31   :  { %p871_p9 = pnand %p870_p8, %p864_p5 }
  0x33   :  { %874 = shalt.err (!%p871_p9)
}
  0x34   :  { %52 = dma.hbm_to_vmem [thread:$0]  %s1103_s2, 2048, %s47_s10, [#allocation6], %s929_s17, %s929_s17, %s930_s18  }
  0x35   :  { %s875_s25 = scalar_lea.hbm %s1105_s4, 2048 }
  0x36   :  { %p876_p10 = scmp.ne.s32.totalorder %s1105_s4, %s875_s25  ;;  %p879_p11 = scmp.lt.u32.totalorder %s875_s25, %s1105_s4 }
  0x38   :  { %p881_p12 = pnand %p879_p11, %p876_p10 }
  0x3a   :  { %884 = shalt.err (!%p881_p12)
}
  0x3b   :  { %s885_s28 = scalar_lea.vmem %s1017_s12, 2048  ;;  %p890_p0 = scmp.lt.s32.totalorder %s1017_s12, %s1017_s12 }
  0x3c   :  { %p886_p13 = scmp.ne.s32.totalorder %s1017_s12, %s885_s28  ;;  %p891_p1 = scmp.lt.s32.totalorder %s885_s28, %s885_s28 }
  0x3e   :  { %p892_p2 = por %p891_p1, %p890_p0 }
  0x40   :  { %p893_p3 = pnand %p892_p2, %p886_p13 }
  0x42   :  { %896 = shalt.err (!%p893_p3)
}
  0x43   :  { %66 = dma.hbm_to_vmem [thread:$0]  %s1105_s4, 2048, %s1017_s12, [#allocation9], %s929_s17, %s929_s17, %s930_s18  }
  0x44   :  { %919 = dma.done.wait [#allocation3], 512  }
  0x45   :  { %920 = vsyncadd [#allocation3], 4294966784 }
  0x46   :  { %921 = dma.done.wait [#allocation6], 2560  }
  0x47   :  { %922 = vsyncadd [#allocation6], 4294964736 }
  0x48   :  { %923 = dma.done.wait [#allocation9], 2048  }
  0x49   :  { %924 = vsyncadd [#allocation9], 4294965248  ;;  %v89_v0 = vld [vmem:[#allocation7] sm:$0xff]  ;;  %v90_v1 = vld [vmem:[#allocation7 + $0x8] sm:$0xff]  ;;  %vm201_vm0 = vcmask 130048   ;;  %s934_s15 = smov [#allocation10]  }
  0x4a   :  { %v91_v2 = vld [vmem:[#allocation7 + $0x10] sm:$0xff]  ;;  %v721_v3 = vpack.c.bf16 %v90_v1, %v89_v0  ;;  %v92_v4 = vld [vmem:[#allocation7 + $0x18] sm:$0xff]  ;;  %v93_v6 = vld [vmem:[#allocation7 + $0x20] sm:$0xff] }
  0x4b   :  { %v725_v5 = vpack.c.bf16 %v92_v4, %v91_v2  ;;  %v94_v7 = vld [vmem:[#allocation7 + $0x28] sm:$0xff]  ;;  %v1054_v9 = vld [vmem:[#allocation2] sm:$0xff]  ;;  %v95_v10 = vld [vmem:[#allocation7 + $0x30] sm:$0xff] }
  0x4c   :  { %722 = vmatprep.subr.bf16.mxu0 %v721_v3  ;;  %v729_v8 = vpack.c.bf16 %v94_v7, %v93_v6  ;;  %v96_v11 = vld [vmem:[#allocation7 + $0x38] sm:$0xff]  ;;  %663 = vmatprep.mubr.f32.mxu0 %v1054_v9  ;;  %v97_v13 = vld [vmem:[#allocation7 + $0x40] sm:$0xff]  ;;  %v98_v14 = vld [vmem:[#allocation7 + $0x48] sm:$0xff] }
  0x4d   :  { %724 = vmatpush3.bf16.msra.mxu0 %v721_v3  ;;  %v733_v12 = vpack.c.bf16 %v96_v11, %v95_v10  ;;  %v737_v15 = vpack.c.bf16 %v98_v14, %v97_v13  ;;  %v99_v16 = vld [vmem:[#allocation7 + $0x50] sm:$0xff]  ;;  %v100_v17 = vld [vmem:[#allocation7 + $0x58] sm:$0xff]  ;;  %v101_v19 = vld [vmem:[#allocation7 + $0x60] sm:$0xff] }
  0x4e   :  { %726 = vmatprep.subr.bf16.mxu0 %v725_v5  ;;  %v741_v18 = vpack.c.bf16 %v100_v17, %v99_v16  ;;  %v102_v20 = vld [vmem:[#allocation7 + $0x68] sm:$0xff]  ;;  %v103_v22 = vld [vmem:[#allocation7 + $0x70] sm:$0xff]  ;;  %v104_v23 = vld [vmem:[#allocation7 + $0x78] sm:$0xff] }
  0x4f   :  { %v745_v21 = vpack.c.bf16 %v102_v20, %v101_v19  ;;  %v749_v24 = vpack.c.bf16 %v104_v23, %v103_v22  ;;  %v1057_v25 = vld [vmem:[#allocation2 + $0x8] sm:$0xff]  ;;  %v1059_v26 = vld [vmem:[#allocation2 + $0x10] sm:$0xff]  ;;  %v1063_v27 = vld [vmem:[#allocation2 + $0x18] sm:$0xff] }
  0x50   :  { %v197_v28 = vld [vmem:[#allocation5] sm:$0xff]  ;;  %v199_v29 = vld [vmem:[#allocation5 + $0x10] sm:$0xff]  ;;  %v365_v40 = vld [vmem:[#allocation8 + $0x8] sm:$0xff] }
  0x51   :  { %728 = vmatpush3.bf16.msra.mxu0 %v725_v5  ;;  %680 = vmatprep.mubr.msk.f32.mxu1 %vm201_vm0, %v199_v29  ;;  %v574_v30 = vld [vmem:[%s1104_s3] ss:$0 sm:$0xff]  ;;  %v198_v42 = vld [vmem:[#allocation5 + $0x8] sm:$0xff]  ;;  %v366_v45 = vld [vmem:[#allocation8 + $0x10] sm:$0xff] }
  0x52   :  { %730 = vmatprep.subr.bf16.mxu0 %v729_v8  ;;  %v364_v39 = vld [vmem:[#allocation8] sm:$0xff]  ;;  %v367_v46 = vld [vmem:[#allocation8 + $0x18] sm:$0xff]  ;;  %v369_v50 = vld [vmem:[#allocation8 + $0x28] sm:$0xff] }
  0x53   :  { %v761_v44 = vpack.c.bf16 %v365_v40, %v364_v39  ;;  %v200_v47 = vld [vmem:[#allocation5 + $0x18] sm:$0xff]  ;;  %v765_v48 = vpack.c.bf16 %v367_v46, %v366_v45  ;;  %v368_v49 = vld [vmem:[#allocation8 + $0x20] sm:$0xff]  ;;  %v370_v52 = vld [vmem:[#allocation8 + $0x30] sm:$0xff] }
  0x54   :  { %v769_v51 = vpack.c.bf16 %v369_v50, %v368_v49  ;;  %v371_v53 = vld [vmem:[#allocation8 + $0x38] sm:$0xff]  ;;  %v372_v55 = vld [vmem:[#allocation8 + $0x40] sm:$0xff]  ;;  %v373_v56 = vld [vmem:[#allocation8 + $0x48] sm:$0xff] }
  0x55   :  { %732 = vmatpush3.bf16.msra.mxu0 %v729_v8  ;;  %v773_v54 = vpack.c.bf16 %v371_v53, %v370_v52  ;;  %v777_v57 = vpack.c.bf16 %v373_v56, %v372_v55  ;;  %v374_v58 = vld [vmem:[#allocation8 + $0x50] sm:$0xff]  ;;  %v375_v59 = vld [vmem:[#allocation8 + $0x58] sm:$0xff]  ;;  %v376_v61 = vld [vmem:[#allocation8 + $0x60] sm:$0xff] }
  0x56   :  { %734 = vmatprep.subr.bf16.mxu0 %v733_v12  ;;  %v781_v60 = vpack.c.bf16 %v375_v59, %v374_v58  ;;  %v377_v62 = vld [vmem:[#allocation8 + $0x68] sm:$0xff]  ;;  %v378_v0 = vld [vmem:[#allocation8 + $0x70] sm:$0xff]  ;;  %v379_v1 = vld [vmem:[#allocation8 + $0x78] sm:$0xff] }
  0x57   :  { %v785_v63 = vpack.c.bf16 %v377_v62, %v376_v61  ;;  %v789_v2 = vpack.c.bf16 %v379_v1, %v378_v0  ;;  %v579_v7 = vld [vmem:[%s1106_s5] ss:$0 sm:$0xff] }
  0x58   :  { %v582_v59 = vld [vmem:[%s1108_s7] ss:$0 sm:$0xff] }
  0x59   :  { %736 = vmatpush3.bf16.msra.mxu0 %v733_v12 }
  0x5a   :  { %738 = vmatprep.subr.bf16.mxu0 %v737_v15 }
  0x5d   :  { %740 = vmatpush3.bf16.msra.mxu0 %v737_v15 }
  0x5e   :  { %742 = vmatprep.subr.bf16.mxu0 %v741_v18 }
  0x61   :  { %744 = vmatpush3.bf16.msra.mxu0 %v741_v18 }
  0x62   :  { %746 = vmatprep.subr.bf16.mxu0 %v745_v21 }
  0x65   :  { %748 = vmatpush3.bf16.msra.mxu0 %v745_v21  ;;  %v494_v21 = vlaneseq }
  0x66   :  { %750 = vmatprep.subr.bf16.mxu0 %v749_v24 }
  0x67   :  { %v495_v22 = vand.u32 127, %v494_v21 }
  0x69   :  { %752 = vmatpush3.bf16.msra.mxu0 %v749_v24  ;;  %vm496_vm1 = vcmp.lt.s32.totalorder %v495_v22, 96 }
  0x6c   :  { %664 = vmatmul.mubr.f32.vlgmr.msra.gmra.mrb[0].mxu0 %v1057_v25 }
  0x6d   :  { %666 = vmatprep.mubr.f32.mxu0 %v1059_v26 }
  0x70   :  { %667 = vmatmul.mubr.f32.gmra.mrb[2].mxu0 %v1063_v27 }
  0x71   :  { %673 = vmatprep.mubr.msk.f32.mxu0 %vm201_vm0, %v197_v28  ;;  %v933_v28 = vmov 0.0  }
 0x13f   :  { %v665_v31 = vpop.f32.mrb[0].mxu0 }
 0x140   :  { %v184_v32 = vadd.f32 %v665_v31, %v574_v30  ;;  %v178_v33 = vpop.f32.mrb[1].mxu0 }
 0x141   :  { %v179_v34 = vadd.f32 %v574_v30, %v178_v33 }
 0x143   :  { %v753_v35 = vpack.c.bf16 %v184_v32, %v179_v34  ;;  %v668_v36 = vpop.f32.mrb[2].mxu0 }
 0x144   :  { %v194_v37 = vadd.f32 %v668_v36, %v574_v30  ;;  %v188_v38 = vpop.f32.mrb[3].mxu0 }
 0x145   :  { %v189_v41 = vadd.f32 %v574_v30, %v188_v38  ;;  %754 = vmatprep.subr.bf16.mxu0 %v753_v35 }
 0x146   :  { %756 = vmatpush3.bf16.msra.mxu0 %v753_v35 }
 0x147   :  { %v757_v43 = vpack.c.bf16 %v194_v37, %v189_v41 }
 0x149   :  { %674 = vmatmul.mubr.msk.f32.vlgmr.msra.gmra.mrb[4].mxu0 %vm201_vm0, %v198_v42  ;;  %758 = vmatprep.subr.bf16.mxu1 %v757_v43 }
 0x14a   :  { %760 = vmatpush3.bf16.msra.mxu1 %v757_v43 }
 0x14b   :  { %762 = vmatprep.subr.bf16.mxu1 %v761_v44 }
 0x14d   :  { %681 = vmatmul.mubr.msk.f32.vlgmr.msra.gmra.mrb[0].mxu1 %vm201_vm0, %v200_v47 }
 0x14e   :  { %764 = vmatpush3.bf16.msra.mxu1 %v761_v44 }
 0x14f   :  { %766 = vmatprep.subr.bf16.mxu1 %v765_v48 }
 0x152   :  { %768 = vmatpush3.bf16.msra.mxu1 %v765_v48 }
 0x153   :  { %770 = vmatprep.subr.bf16.mxu1 %v769_v51 }
 0x156   :  { %772 = vmatpush3.bf16.msra.mxu1 %v769_v51 }
 0x157   :  { %774 = vmatprep.subr.bf16.mxu1 %v773_v54 }
 0x15a   :  { %776 = vmatpush3.bf16.msra.mxu1 %v773_v54 }
 0x15b   :  { %778 = vmatprep.subr.bf16.mxu1 %v777_v57 }
 0x15e   :  { %780 = vmatpush3.bf16.msra.mxu1 %v777_v57  ;;  %v581_v57 = vld [vmem:[%s1107_s6] ss:$0 sm:$0xff]  ;;  %s560_s6 = sshll.u32 %s934_s15, 4  ;;  %s561_s6 = int_to_ptr.vmem [resolvable:$true] %s560_s6 }
 0x15f   :  { %782 = vmatprep.subr.bf16.mxu1 %v781_v60  ;;  %s897_s7 = scalar_lea.vmem %s561_s6, 512  ;;  %p902_p5 = scmp.lt.s32.totalorder %s561_s6, %s561_s6 }
 0x160   :  { %p898_p4 = scmp.ne.s32.totalorder %s561_s6, %s897_s7  ;;  %p903_p6 = scmp.lt.s32.totalorder %s897_s7, %s897_s7 }
 0x162   :  { %784 = vmatpush3.bf16.msra.mxu1 %v781_v60  ;;  %p904_p7 = por %p903_p6, %p902_p5 }
 0x163   :  { %786 = vmatprep.subr.bf16.mxu1 %v785_v63 }
 0x164   :  { %p905_p8 = pnand %p904_p7, %p898_p4 }
 0x166   :  { %788 = vmatpush3.bf16.msra.mxu1 %v785_v63 }
 0x167   :  { %790 = vmatprep.subr.bf16.mxu1 %v789_v2 }
 0x16a   :  { %792 = vmatpush3.bf16.msra.mxu1 %v789_v2 }
 0x21c   :  { %v675_v3 = vpop.f32.mrb[4].mxu0 }
 0x21d   :  { %v274_v4 = vpop.f32.mrb[5].mxu0 }
 0x21e   :  { %715 = vmatprep.mubr.f32.mxu1 %v274_v4 }
 0x21f   :  { %716 = vmatmul.mubr.f32.vlgmr.msra.gmra.mrb[2].mxu1 %v675_v3 }
 0x220   :  { %v682_v5 = vpop.f32.mrb[0].mxu1 }
 0x221   :  { %v355_v6 = vpop.f32.mrb[1].mxu1 }
 0x222   :  { %718 = vmatprep.mubr.f32.mxu1 %v355_v6 }
 0x223   :  { %719 = vmatmul.mubr.f32.gmra.mrb[4].mxu1 %v682_v5 }
 0x2f2   :  { %v717_v8 = vpop.f32.mrb[2].mxu1 }
 0x2f3   :  { %v453_v10 = vpop.f32.mrb[3].mxu1  ;;  %v459_v12 = vadd.f32 %v717_v8, %v579_v7 }
 0x2f4   :  { %v454_v11 = vadd.f32 %v579_v7, %v453_v10 }
 0x2f5   :  { %v473_v19 = vadd.f32 %v459_v12, %v1057_v25 }
 0x2f6   :  { %v720_v13 = vpop.f32.mrb[4].mxu1  ;;  %v472_v14 = vadd.f32 %v454_v11, %v1054_v9  ;;  %v580_v9 = vsel %vm496_vm1, 1.0, %v933_v28 }
 0x2f7   :  { %v463_v15 = vpop.f32.mrb[5].mxu1  ;;  %v469_v17 = vadd.f32 %v720_v13, %v579_v7 }
 0x2f8   :  { %v464_v16 = vadd.f32 %v579_v7, %v463_v15  ;;  %478 = vadd.xlane.f32.xlu0 %v472_v14 }
 0x2f9   :  { %v475_v20 = vadd.f32 %v469_v17, %v1063_v27 }
 0x2fa   :  { %v474_v18 = vadd.f32 %v464_v16, %v1059_v26 }
 0x2fc   :  { %482 = vadd.xlane.f32.xlu1 %v474_v18  ;;  %480 = vadd.xlane.f32.xlu0 %v473_v19 }
 0x300   :  { %484 = vadd.xlane.f32.xlu1 %v475_v20 }
 0x385   :  { %v479_v23 = vpop.xlane.xlu0 %478 }
 0x386   :  { %v486_v24 = vmul.f32 0.010416667, %v479_v23 }
 0x388   :  { %v490_v29 = vsub.f32 %v472_v14, %v486_v24 }
 0x389   :  { %v483_v30 = vpop.xlane.xlu1 %482  ;;  %v481_v31 = vpop.xlane.xlu0 %480 }
 0x38a   :  { %v488_v32 = vmul.f32 0.010416667, %v483_v30  ;;  %v487_v33 = vmul.f32 0.010416667, %v481_v31  ;;  %v499_v26 = vmul.f32 %v580_v9, %v490_v29 }
 0x38c   :  { %v492_v34 = vsub.f32 %v474_v18, %v488_v32  ;;  %v491_v25 = vsub.f32 %v473_v19, %v487_v33  ;;  %v503_v35 = vmul.f32 %v499_v26, %v499_v26 }
 0x38d   :  { %v485_v36 = vpop.xlane.xlu1 %484 }
 0x38e   :  { %v489_v37 = vmul.f32 0.010416667, %v485_v36  ;;  %507 = vadd.xlane.f32.xlu0 %v503_v35  ;;  %v501_v27 = vmul.f32 %v580_v9, %v492_v34  ;;  %v500_v38 = vmul.f32 %v580_v9, %v491_v25 }
 0x390   :  { %v493_v39 = vsub.f32 %v475_v20, %v489_v37  ;;  %v505_v40 = vmul.f32 %v501_v27, %v501_v27  ;;  %v504_v41 = vmul.f32 %v500_v38, %v500_v38 }
 0x392   :  { %511 = vadd.xlane.f32.xlu0 %v505_v40  ;;  %509 = vadd.xlane.f32.xlu1 %v504_v41  ;;  %v502_v42 = vmul.f32 %v580_v9, %v493_v39 }
 0x394   :  { %v506_v43 = vmul.f32 %v502_v42, %v502_v42 }
 0x396   :  { %513 = vadd.xlane.f32.xlu1 %v506_v43 }
 0x41b   :  { %v508_v44 = vpop.xlane.xlu0 %507 }
 0x41c   :  { %v515_v45 = vmul.f32 0.010416667, %v508_v44 }
 0x41e   :  { %v519_v46 = vadd.f32 1e-05, %v515_v45 }
 0x41f   :  { %v510_v47 = vpop.xlane.xlu1 %509  ;;  %v512_v48 = vpop.xlane.xlu0 %511 }
 0x420   :  { %801 = vrsqrt.f32 %v519_v46  ;;  %v516_v49 = vmul.f32 0.010416667, %v510_v47  ;;  %v517_v50 = vmul.f32 0.010416667, %v512_v48 }
 0x422   :  { %v520_v51 = vadd.f32 1e-05, %v516_v49  ;;  %v521_v52 = vadd.f32 1e-05, %v517_v50 }
 0x423   :  { %v514_v53 = vpop.xlane.xlu1 %513 }
 0x424   :  { %803 = vrsqrt.f32 %v520_v51  ;;  %v518_v54 = vmul.f32 0.010416667, %v514_v53 }
 0x425   :  { %805 = vrsqrt.f32 %v521_v52 }
 0x426   :  { %v522_v55 = vadd.f32 1e-05, %v518_v54 }
 0x428   :  { %807 = vrsqrt.f32 %v522_v55 }
 0x42a   :  { %v802_v56 = vpop.eup %801 }
 0x42b   :  { %v527_v58 = vmul.f32 %v802_v56, %v499_v26 }
 0x42d   :  { %v537_v60 = vmul.f32 %v581_v57, %v527_v58 }
 0x42e   :  { %v804_v61 = vpop.eup %803 }
 0x42f   :  { %v806_v62 = vpop.eup %805  ;;  %v528_v63 = vmul.f32 %v804_v61, %v500_v38  ;;  %v547_v0 = vadd.f32 %v582_v59, %v537_v60 }
 0x430   :  { %v529_v1 = vmul.f32 %v806_v62, %v501_v27 }
 0x431   :  { %v538_v2 = vmul.f32 %v581_v57, %v528_v63  ;;  %551 = vst [vmem:[#allocation10] sm:$0xff] %v547_v0 }
 0x432   :  { %v808_v3 = vpop.eup %807  ;;  %v539_v4 = vmul.f32 %v581_v57, %v529_v1 }
 0x433   :  { %v530_v5 = vmul.f32 %v808_v3, %v502_v42  ;;  %v548_v6 = vadd.f32 %v582_v59, %v538_v2 }
 0x434   :  { %v549_v7 = vadd.f32 %v582_v59, %v539_v4 }
 0x435   :  { %v540_v8 = vmul.f32 %v581_v57, %v530_v5  ;;  %552 = vst [vmem:[#allocation10 + $0x8] sm:$0xff] %v548_v6 }
 0x436   :  { %553 = vst [vmem:[#allocation10 + $0x10] sm:$0xff] %v549_v7 }
 0x437   :  { %v550_v10 = vadd.f32 %v582_v59, %v540_v8 }
 0x439   :  { %554 = vst [vmem:[#allocation10 + $0x18] sm:$0xff] %v550_v10 }
 0x43a   :  { %908 = shalt.err (!%p905_p8)
}
 0x43b   :  { %s909_s20 = scalar_lea.hbm %s1109_s8, 512 }
 0x43c   :  { %p910_p9 = scmp.ne.s32.totalorder %s1109_s8, %s909_s20  ;;  %p913_p10 = scmp.lt.u32.totalorder %s909_s20, %s1109_s8 }
 0x43e   :  { %p915_p11 = pnand %p913_p10, %p910_p9 }
 0x440   :  { %918 = shalt.err (!%p915_p11)
}
 0x441   :  { %566 = dma.vmem_to_hbm [thread:$0]  %s561_s6, 512, %s1109_s8, [#allocation4], %s929_s17, %s929_s17, %s930_s18  }
 0x442   :  { %925 = dma.done.wait [#allocation4], 512  }
 0x443   :  { %926 = vsyncadd [#allocation4], 4294966784 }
 0x444   :  { %570 = vsyncpa [#allocation3], 1 }
 0x445   :  { %571 = vsyncpa [#allocation6], 1 }
 0x446   :  { %572 = vsyncpa [#allocation9], 1 }
 0x447   :  { %573 = vsyncpa [#allocation4], 1 }

</bundles_post_ra>
